<compile_context>
chip_gen: v5e
topology: v5e:2x2
jax: 0.10.0
libtpu: 0.0.40
codegen_flags: <defaults>
</compile_context>

<pallas_src>
import functools

import jax
import jax.numpy as jnp
from jax.experimental import pallas as pl
from jax.experimental.pallas import tpu as pltpu


def _round_up(x, m):
    return ((x + m - 1) // m) * m


def _vmem_limit_bytes():
    # ~half of physical VMEM: 64 MiB on v5e/v6e (128 MiB phys), 32 MiB on v7x (64 MiB).
    try:
        cap = int(pltpu.get_tpu_info().vmem_capacity_bytes)
    except Exception:
        cap = 64 * 1024 * 1024
    return int(min(64 * 1024 * 1024, cap // 2))


# ----------------------------------------------------------------------------
# Kernel 1: dense + bias + ReLU fused with BN batch statistics
# ----------------------------------------------------------------------------
def _dense_relu_stats_kernel(x_ref, w_ref, b_ref, y_ref, sum_ref, sq_ref,
                             *, m_real, tm):
    @pl.when(pl.program_id(0) == 0)
    def _():
        sum_ref[...] = jnp.zeros_like(sum_ref)
        sq_ref[...] = jnp.zeros_like(sq_ref)

    y = jnp.dot(x_ref[...], w_ref[...], preferred_element_type=jnp.float32)
    y = jnp.maximum(y + b_ref[...], 0.0)
    y_ref[...] = y.astype(y_ref.dtype)

    # Mask rows that only exist because M was padded up to a multiple of tm.
    rid = pl.program_id(0) * tm + jax.lax.broadcasted_iota(jnp.int32, y.shape, 0)
    ys = jnp.where(rid < m_real, y, 0.0)
    sum_ref[...] += jnp.sum(ys, axis=0, keepdims=True)
    sq_ref[...] += jnp.sum(ys * ys, axis=0, keepdims=True)


def dense_relu_stats(x, w, b):
    M, K = x.shape
    Nf = w.shape[1]
    tm = 1024 if M >= 1024 else _round_up(M, 8)
    M_pad = _round_up(M, tm)
    if M_pad != M:
        x = jnp.pad(x, ((0, M_pad - M), (0, 0)))
    kernel = functools.partial(_dense_relu_stats_kernel, m_real=M, tm=tm)
    y, s, q = pl.pallas_call(
        kernel,
        out_shape=(jax.ShapeDtypeStruct((M_pad, Nf), jnp.bfloat16),
                   jax.ShapeDtypeStruct((1, Nf), jnp.float32),
                   jax.ShapeDtypeStruct((1, Nf), jnp.float32)),
        grid=(M_pad // tm,),
        in_specs=[
            pl.BlockSpec((tm, K), lambda i: (i, 0)),
            pl.BlockSpec((K, Nf), lambda i: (0, 0)),
            pl.BlockSpec((1, Nf), lambda i: (0, 0)),
        ],
        out_specs=(pl.BlockSpec((tm, Nf), lambda i: (i, 0)),
                   pl.BlockSpec((1, Nf), lambda i: (0, 0)),
                   pl.BlockSpec((1, Nf), lambda i: (0, 0))),
        # Stats outputs are revisited across the grid -> reduction axis.
        compiler_params=pltpu.CompilerParams(
            dimension_semantics=("arbitrary",)),
    )(x.astype(jnp.bfloat16), w.astype(jnp.bfloat16),
      b.reshape(1, Nf).astype(jnp.float32))
    return y[:M], s, q


# ----------------------------------------------------------------------------
# Kernel 2: _BNReluConv (train-mode BN -> ReLU -> Conv2d 3x3, pad=1, bias=False)
#           gridded over batch; 9 accumulated bf16 MXU matmuls (no im2col).
# ----------------------------------------------------------------------------
def _bn_relu_conv3x3_kernel(x_ref, scale_ref, shift_ref, w_ref, o_ref, pad_ref,
                            *, h, w, ci, co):
    # Scratch persists across grid steps; the zero border only needs writing once.
    @pl.when(pl.program_id(0) == 0)
    def _():
        pad_ref[...] = jnp.zeros_like(pad_ref)

    x = x_ref[0].astype(jnp.float32)                               # (h, w, ci)
    scale = scale_ref[...].reshape(1, 1, ci)
    shift = shift_ref[...].reshape(1, 1, ci)
    xn = jnp.maximum(x * scale + shift, 0.0)
    # Interior lives at rows [1, 1+h), cols [2, 2+w): the bf16 store lands on an
    # even (pair-aligned) sublane offset; the zero border is never overwritten.
    pad_ref[1:1 + h, 2:2 + w, :] = xn.astype(jnp.bfloat16)

    # 3x3 conv as 9 accumulated matmuls; tap (di, dj) reads cols [dj+1, dj+1+w).
    acc = None
    for t in range(9):
        di, dj = divmod(t, 3)
        col = pad_ref[di:di + h, dj + 1:dj + 1 + w, :].reshape(h * w, ci)
        part = jnp.dot(col, w_ref[t * ci:(t + 1) * ci, :],
                       preferred_element_type=jnp.float32)
        acc = part if acc is None else acc + part
    o_ref[0] = acc.reshape(h, w, co)


def bn_relu_conv3x3(x_nhwc, scale, shift, w_mat):
    # TODO(synk): for v7x-scale inputs a second 'parallel' grid axis over row
    # strips (with a 1-row halo) would further cap the per-step VMEM footprint.
    N, h, w, Ci = x_nhwc.shape
    Co = w_mat.shape[-1]
    kernel = functools.partial(_bn_relu_conv3x3_kernel, h=h, w=w, ci=Ci, co=Co)
    return pl.pallas_call(
        kernel,
        out_shape=jax.ShapeDtypeStruct((N, h, w, Co), jnp.float32),
        grid=(N,),
        in_specs=[
            pl.BlockSpec((1, h, w, Ci), lambda n: (n, 0, 0, 0)),
            pl.BlockSpec((1, Ci), lambda n: (0, 0)),
            pl.BlockSpec((1, Ci), lambda n: (0, 0)),
            pl.BlockSpec((9 * Ci, Co), lambda n: (0, 0)),
        ],
        out_specs=pl.BlockSpec((1, h, w, Co), lambda n: (n, 0, 0, 0)),
        scratch_shapes=[pltpu.VMEM((h + 2, w + 4, Ci), jnp.bfloat16)],
        # 'arbitrary' keeps the once-only border zeroing valid on megacore parts.
        compiler_params=pltpu.CompilerParams(
            dimension_semantics=("arbitrary",),
            vmem_limit_bytes=_vmem_limit_bytes()),
    )(x_nhwc.astype(jnp.bfloat16),
      scale.reshape(1, Ci).astype(jnp.float32),
      shift.reshape(1, Ci).astype(jnp.float32),
      w_mat.astype(jnp.bfloat16))


# ----------------------------------------------------------------------------
# Kernel 3: gather-first bilinear point sampling of the logits.
#           Scalar-prefetched flat row indices (SMEM) + per-tile weight block.
# ----------------------------------------------------------------------------
def _point_gather_kernel(idx_ref, x_ref, wgt_ref, o_ref, rows_ref, *, tp, co):
    base = pl.program_id(0) * tp

    def body(p, carry):
        g = base + p
        for k in range(4):
            rows_ref[pl.ds(p, 1), k * co:(k + 1) * co] = (
                x_ref[pl.ds(idx_ref[k, g], 1), :])
        return carry

    jax.lax.fori_loop(0, tp, body, 0)

    wt = wgt_ref[...]                                              # (tp, 4)
    acc = rows_ref[:, 0:co] * wt[:, 0:1]
    for k in range(1, 4):
        acc = acc + rows_ref[:, k * co:(k + 1) * co] * wt[:, k:k + 1]
    o_ref[...] = acc


def point_gather(x_flat, idx, wgt):
    K, Co = x_flat.shape
    R = idx.shape[1]
    tp = 128 if R >= 128 else _round_up(R, 8)
    R_pad = _round_up(R, tp)
    if R_pad != R:
        idx = jnp.pad(idx, ((0, 0), (0, R_pad - R)))   # padded points read row 0
        wgt = jnp.pad(wgt, ((0, 0), (0, R_pad - R)))   # ... with zero weight
    wgt_rows = jnp.transpose(wgt)                                  # (R_pad, 4)
    kernel = functools.partial(_point_gather_kernel, tp=tp, co=Co)
    grid_spec = pltpu.PrefetchScalarGridSpec(
        num_scalar_prefetch=1,
        grid=(R_pad // tp,),
        in_specs=[pl.BlockSpec((K, Co), lambda i, idx_ref: (0, 0)),
                  pl.BlockSpec((tp, 4), lambda i, idx_ref: (i, 0))],
        out_specs=pl.BlockSpec((tp, Co), lambda i, idx_ref: (i, 0)),
        scratch_shapes=[pltpu.VMEM((tp, 4 * Co), jnp.float32)])
    return pl.pallas_call(
        kernel,
        out_shape=jax.ShapeDtypeStruct((R_pad, Co), jnp.float32),
        grid_spec=grid_spec,
        compiler_params=pltpu.CompilerParams(
            dimension_semantics=("parallel",),
            vmem_limit_bytes=_vmem_limit_bytes()),
    )(idx, x_flat, wgt_rows)


def _bilinear_point_coeffs(rows, cols, in_h, in_w, out_h, out_w, base):
    """Flat source indices + weights reproducing F.interpolate(mode='bilinear',
    align_corners=False) sampled at integer output locations (rows, cols)."""
    rows = rows.astype(jnp.float32)
    cols = cols.astype(jnp.float32)
    sr = jnp.maximum((rows + 0.5) * (in_h / out_h) - 0.5, 0.0)
    sc = jnp.maximum((cols + 0.5) * (in_w / out_w) - 0.5, 0.0)
    i0 = jnp.minimum(jnp.floor(sr), in_h - 1).astype(jnp.int32)
    j0 = jnp.minimum(jnp.floor(sc), in_w - 1).astype(jnp.int32)
    fr = sr - i0.astype(jnp.float32)
    fc = sc - j0.astype(jnp.float32)
    i1 = jnp.minimum(i0 + 1, in_h - 1)
    j1 = jnp.minimum(j0 + 1, in_w - 1)
    idx = jnp.stack([base + i0 * in_w + j0, base + i0 * in_w + j1,
                     base + i1 * in_w + j0, base + i1 * in_w + j1], axis=0)
    wgt = jnp.stack([(1.0 - fr) * (1.0 - fc), (1.0 - fr) * fc,
                     fr * (1.0 - fc), fr * fc], axis=0)
    return idx.astype(jnp.int32), wgt.astype(jnp.float32)


# ----------------------------------------------------------------------------
# Synthetic backbone (stand-in for the external RFNet resnet backbone)
# ----------------------------------------------------------------------------
def synthetic_backbone(img_nchw, depth_chw, w_bb, b_bb):
    # TODO(synk): the real RFNet backbone is an external module not defined in
    # rfnet.py; this deterministic 4x4-patchify + dense + ReLU stands in for it.
    N, _, H, W = img_nchw.shape
    depth_n = jnp.broadcast_to(depth_chw[None], (N,) + depth_chw.shape)  # (N,1,H,W)
    x = jnp.concatenate([img_nchw, depth_n], axis=1)                     # (N,4,H,W)
    x = jnp.transpose(x, (0, 2, 3, 1))                                   # NHWC
    h, w = H // 4, W // 4
    x = x.reshape(N, h, 4, w, 4, 4).transpose(0, 1, 3, 2, 4, 5).reshape(N, h, w, 64)
    y, sum_c, sq_c = dense_relu_stats(x.reshape(N * h * w, 64), w_bb, b_bb)
    return y.reshape(N, h, w, -1), (sum_c, sq_c)


# ----------------------------------------------------------------------------
# RFNet_2DPass forward
# ----------------------------------------------------------------------------
def rfnet_2dpass_forward(data_dict, params, eps=1e-5):
    img = data_dict['img']                                    # (N, 3, H, W)
    depth = jnp.transpose(data_dict['depth'][0], (2, 0, 1))   # (1, H, W)
    data_dict['depth'] = depth

    feat, (sum_c, sq_c) = synthetic_backbone(img, depth,
                                             params['w_bb'], params['b_bb'])
    N, h, w, Cf = feat.shape
    H, W = img.shape[2], img.shape[3]

    # Train-mode BatchNorm scale/shift from the fused batch statistics (hoisted
    # out of the conv kernel: computed once here, not per grid step).
    count = float(N * h * w)
    mean = sum_c / count                                      # (1, Cf)
    var = sq_c / count - mean * mean
    scale = params['gamma'].reshape(1, Cf) * jax.lax.rsqrt(var + eps)
    shift = params['beta'].reshape(1, Cf) - mean * scale

    # Pad output channels to a lane-dense 128; real classes sliced at the end.
    w_mat = params['w_mat']                                   # (9*Cf, num_classes)
    n_cls = w_mat.shape[1]
    co_pad = _round_up(n_cls, 128)
    w_pad = jnp.pad(w_mat, ((0, 0), (0, co_pad - n_cls)))

    logits = bn_relu_conv3x3(feat, scale, shift, w_pad)       # (N, h, w, co_pad)

    # Gather-first: the reference's full-resolution (480,480) and (H,W)
    # upsampled + tiled + concatenated tensors are only ever read at
    # img_indices before being overwritten, so sample those points directly.
    img_indices = data_dict['img_indices']
    counts = [int(ix.shape[0]) for ix in img_indices]
    P = sum(counts)
    idx_e, wgt_e, idx_s, wgt_s = [], [], [], []
    for i in range(N):
        r = img_indices[i][:, 0]
        c = img_indices[i][:, 1]
        base = i * h * w
        ia, wa = _bilinear_point_coeffs(r, c, h, w, 480, 480, base)
        ib, wb = _bilinear_point_coeffs(r, c, h, w, H, W, base)
        idx_e.append(ia); wgt_e.append(wa)
        idx_s.append(ib); wgt_s.append(wb)
    idx = jnp.concatenate(idx_e + idx_s, axis=1)              # (4, 2P)
    wgt = jnp.concatenate(wgt_e + wgt_s, axis=1)

    gathered = point_gather(logits.reshape(N * h * w, co_pad), idx, wgt)
    gathered = gathered[:2 * P, :n_cls]
    g480, gHW = gathered[:P], gathered[P:]

    def _expand_channels(g):  # .repeat(1,3,1,1) then cat(first 4 channels), per point
        rep = jnp.concatenate([g, g, g], axis=-1)
        return jnp.concatenate([rep, rep[:, :4]], axis=-1)

    e_pts = _expand_channels(g480)
    s_pts = _expand_channels(gHW)
    data_dict['img_scale2'] = e_pts
    data_dict['img_scale4'] = e_pts
    data_dict['img_scale8'] = s_pts
    data_dict['img_scale16'] = s_pts
    return data_dict


# ----------------------------------------------------------------------------
if __name__ == "__main__":
    key = jax.random.PRNGKey(0)
    N, H, W = 2, 32, 32
    num_features, num_classes = 128, 4     # RFNet logits head: 128 features -> classes

    k1, k2, k3, k4, k5, k6 = jax.random.split(key, 6)
    img = jax.random.normal(k1, (N, 3, H, W), jnp.float32)
    depth_raw = jax.random.normal(k2, (1, H, W, 1), jnp.float32)   # pre-permute depth
    img_indices = [
        jax.random.randint(k3, (6, 2), 0, H).astype(jnp.int32),
        jax.random.randint(k4, (5, 2), 0, H).astype(jnp.int32),
    ]

    # Deterministic parameters (shapes from the module's __init__).
    w_bb = 0.05 * jax.random.normal(k5, (64, num_features), jnp.float32)
    b_bb = 0.01 * jnp.arange(num_features, dtype=jnp.float32)
    gamma = 1.0 + 0.01 * jnp.arange(num_features, dtype=jnp.float32)   # BN weight
    beta = 0.02 * jnp.arange(num_features, dtype=jnp.float32)          # BN bias
    w_conv = 0.05 * jax.random.normal(k6, (num_classes, num_features, 3, 3),
                                      jnp.float32)                     # torch (Co,Ci,3,3)
    # torch (Co,Ci,kh,kw) -> im2col weight (kh*kw*Ci, Co): tap-major, channel-minor
    w_mat = jnp.transpose(w_conv, (2, 3, 1, 0)).reshape(9 * num_features, num_classes)

    params = {'w_bb': w_bb, 'b_bb': b_bb, 'gamma': gamma, 'beta': beta,
              'w_mat': w_mat}

    data_dict = {'img': img, 'depth': depth_raw, 'img_indices': img_indices}
    out = rfnet_2dpass_forward(data_dict, params)

    jax.block_until_ready(out['img_scale2'])
    jax.block_until_ready(out['img_scale8'])
    jax.block_until_ready(out['depth'])
    print("KERNEL_OK")
</pallas_src>

<mosaic_0001>
module attributes {stable_mosaic.version = 11 : i64} {
  func.func @_dense_relu_stats_kernel(%arg0: i32, %arg1: memref<128x64xbf16, #tpu.memory_space<vmem>>, %arg2: memref<64x128xbf16, #tpu.memory_space<vmem>>, %arg3: memref<1x128xf32, #tpu.memory_space<vmem>>, %arg4: memref<128x128xbf16, #tpu.memory_space<vmem>>, %arg5: memref<1x128xf32, #tpu.memory_space<vmem>>, %arg6: memref<1x128xf32, #tpu.memory_space<vmem>>) attributes {dimension_semantics = [#tpu.dimension_semantics<arbitrary>], iteration_bounds = array<i64: 1>, scalar_prefetch = 0 : i64, scratch_operands = 0 : i64, tpu.core_type = #tpu.core_type<tc>, window_params = [{transform_indices = @transform_0, window_bounds = array<i64: 128, 64>}, {pipeline_mode = #tpu.pipeline_mode<synchronous>, transform_indices = @transform_1, window_bounds = array<i64: 64, 128>}, {pipeline_mode = #tpu.pipeline_mode<synchronous>, transform_indices = @transform_2, window_bounds = array<i64: 1, 128>}, {transform_indices = @transform_3, window_bounds = array<i64: 128, 128>}, {pipeline_mode = #tpu.pipeline_mode<synchronous>, transform_indices = @transform_4, window_bounds = array<i64: 1, 128>}, {pipeline_mode = #tpu.pipeline_mode<synchronous>, transform_indices = @transform_5, window_bounds = array<i64: 1, 128>}]} {
    %c0_i32 = arith.constant 0 : i32
    %0 = arith.cmpi eq, %arg0, %c0_i32 : i32
    %1 = arith.extui %0 : i1 to i32
    %c0_i32_0 = arith.constant 0 : i32
    %2 = arith.cmpi ne, %1, %c0_i32_0 : i32
    scf.if %2 {
      %cst_21 = arith.constant 0.000000e+00 : f32
      %32 = vector.broadcast %cst_21 : f32 to vector<1x128xf32>
      %c0_22 = arith.constant 0 : index
      %c0_23 = arith.constant 0 : index
      %33 = vector.load %arg5[%c0_22, %c0_23] : memref<1x128xf32, #tpu.memory_space<vmem>>, vector<1x128xf32>
      tpu.vector_store %arg5[%c0_22, %c0_23], %32 {strides = array<i32>} : memref<1x128xf32, #tpu.memory_space<vmem>>, vector<1x128xf32>,
      %cst_24 = arith.constant 0.000000e+00 : f32
      %34 = vector.broadcast %cst_24 : f32 to vector<1x128xf32>
      %c0_25 = arith.constant 0 : index
      %c0_26 = arith.constant 0 : index
      %35 = vector.load %arg6[%c0_25, %c0_26] : memref<1x128xf32, #tpu.memory_space<vmem>>, vector<1x128xf32>
      tpu.vector_store %arg6[%c0_25, %c0_26], %34 {strides = array<i32>} : memref<1x128xf32, #tpu.memory_space<vmem>>, vector<1x128xf32>,
    } else {
    }
    %c0 = arith.constant 0 : index
    %c0_1 = arith.constant 0 : index
    %3 = vector.load %arg1[%c0, %c0_1] : memref<128x64xbf16, #tpu.memory_space<vmem>>, vector<128x64xbf16>
    %c0_2 = arith.constant 0 : index
    %c0_3 = arith.constant 0 : index
    %4 = vector.load %arg2[%c0_2, %c0_3] : memref<64x128xbf16, #tpu.memory_space<vmem>>, vector<64x128xbf16>
    %cst = arith.constant dense<0.000000e+00> : vector<128x128xf32>
    %5 = tpu.matmul %3, %4, %cst {dimension_numbers = #tpu.dot_dimension_numbers<[1], [0], [0], [1], [0, 0, 1, 1], [], []>} : vector<128x64xbf16>, vector<64x128xbf16>, vector<128x128xf32> -> vector<128x128xf32>
    %c0_4 = arith.constant 0 : index
    %c0_5 = arith.constant 0 : index
    %6 = vector.load %arg3[%c0_4, %c0_5] : memref<1x128xf32, #tpu.memory_space<vmem>>, vector<1x128xf32>
    %7 = vector.broadcast %6 : vector<1x128xf32> to vector<128x128xf32>
    %8 = arith.addf %5, %7 : vector<128x128xf32>
    %cst_6 = arith.constant 0.000000e+00 : f32
    %9 = vector.broadcast %cst_6 : f32 to vector<128x128xf32>
    %10 = arith.maximumf %8, %9 : vector<128x128xf32>
    %11 = arith.truncf %10 : vector<128x128xf32> to vector<128x128xbf16>
    %c0_7 = arith.constant 0 : index
    %c0_8 = arith.constant 0 : index
    %12 = vector.load %arg4[%c0_7, %c0_8] : memref<128x128xbf16, #tpu.memory_space<vmem>>, vector<128x128xbf16>
    tpu.vector_store %arg4[%c0_7, %c0_8], %11 {strides = array<i32>} : memref<128x128xbf16, #tpu.memory_space<vmem>>, vector<128x128xbf16>,
    %c128_i32 = arith.constant 128 : i32
    %13 = arith.muli %arg0, %c128_i32 : i32
    %14 = tpu.iota {dimensions = array<i32: 0>} : vector<128x128xi32>
    %15 = vector.broadcast %13 : i32 to vector<128x128xi32>
    %16 = arith.addi %15, %14 : vector<128x128xi32>
    %c128_i32_9 = arith.constant 128 : i32
    %17 = vector.broadcast %c128_i32_9 : i32 to vector<128x128xi32>
    %18 = arith.cmpi slt, %16, %17 : vector<128x128xi32>
    %cst_10 = arith.constant 0.000000e+00 : f32
    %19 = vector.broadcast %cst_10 : f32 to vector<128x128xf32>
    %20 = arith.select %18, %10, %19 : vector<128x128xi1>, vector<128x128xf32>
    %c0_11 = arith.constant 0 : index
    %c0_12 = arith.constant 0 : index
    %21 = vector.load %arg5[%c0_11, %c0_12] : memref<1x128xf32, #tpu.memory_space<vmem>>, vector<1x128xf32>
    %cst_13 = arith.constant dense<0.000000e+00> : vector<128xf32>
    %22 = vector.multi_reduction <add>, %20, %cst_13 [0] : vector<128x128xf32> to vector<128xf32>
    %23 = vector.shape_cast %22 : vector<128xf32> to vector<1x128xf32>
    %24 = arith.addf %21, %23 : vector<1x128xf32>
    %c0_14 = arith.constant 0 : index
    %c0_15 = arith.constant 0 : index
    %25 = vector.load %arg5[%c0_14, %c0_15] : memref<1x128xf32, #tpu.memory_space<vmem>>, vector<1x128xf32>
    tpu.vector_store %arg5[%c0_14, %c0_15], %24 {strides = array<i32>} : memref<1x128xf32, #tpu.memory_space<vmem>>, vector<1x128xf32>,
    %c0_16 = arith.constant 0 : index
    %c0_17 = arith.constant 0 : index
    %26 = vector.load %arg6[%c0_16, %c0_17] : memref<1x128xf32, #tpu.memory_space<vmem>>, vector<1x128xf32>
    %27 = arith.mulf %20, %20 : vector<128x128xf32>
    %cst_18 = arith.constant dense<0.000000e+00> : vector<128xf32>
    %28 = vector.multi_reduction <add>, %27, %cst_18 [0] : vector<128x128xf32> to vector<128xf32>
    %29 = vector.shape_cast %28 : vector<128xf32> to vector<1x128xf32>
    %30 = arith.addf %26, %29 : vector<1x128xf32>
    %c0_19 = arith.constant 0 : index
    %c0_20 = arith.constant 0 : index
    %31 = vector.load %arg6[%c0_19, %c0_20] : memref<1x128xf32, #tpu.memory_space<vmem>>, vector<1x128xf32>
    tpu.vector_store %arg6[%c0_19, %c0_20], %30 {strides = array<i32>} : memref<1x128xf32, #tpu.memory_space<vmem>>, vector<1x128xf32>,
    return
  }
  func.func @transform_0(%arg0: i32) -> (i32, i32) {
    %c0_i32 = arith.constant 0 : i32
    %c0_i32_0 = arith.constant 0 : i32
    return %arg0, %c0_i32 : i32, i32
  }
  func.func @transform_1(%arg0: i32) -> (i32, i32) {
    %c0_i32 = arith.constant 0 : i32
    %c0_i32_0 = arith.constant 0 : i32
    %c0_i32_1 = arith.constant 0 : i32
    return %c0_i32, %c0_i32_0 : i32, i32
  }
  func.func @transform_2(%arg0: i32) -> (i32, i32) {
    %c0_i32 = arith.constant 0 : i32
    %c0_i32_0 = arith.constant 0 : i32
    %c0_i32_1 = arith.constant 0 : i32
    return %c0_i32, %c0_i32_0 : i32, i32
  }
  func.func @transform_3(%arg0: i32) -> (i32, i32) {
    %c0_i32 = arith.constant 0 : i32
    %c0_i32_0 = arith.constant 0 : i32
    return %arg0, %c0_i32 : i32, i32
  }
  func.func @transform_4(%arg0: i32) -> (i32, i32) {
    %c0_i32 = arith.constant 0 : i32
    %c0_i32_0 = arith.constant 0 : i32
    %c0_i32_1 = arith.constant 0 : i32
    return %c0_i32, %c0_i32_0 : i32, i32
  }
  func.func @transform_5(%arg0: i32) -> (i32, i32) {
    %c0_i32 = arith.constant 0 : i32
    %c0_i32_0 = arith.constant 0 : i32
    %c0_i32_1 = arith.constant 0 : i32
    return %c0_i32, %c0_i32_0 : i32, i32
  }
}

</mosaic_0001>

<bundles_post_ra>
// kernel: tpu_custom_call.1
= control target key start
LH: loop header
LB: loop body
LE: loop exit
PB: predicated region body
PF: predicated region fallthrough
CT: control target
= control target key end

     0   :  { %11 = vsyncpa [#allocation3], 0  ;;  %s764_s0 = inlined_call_operand.vmem [shape: bf16[128,64], index: 0, kind: input, shape index: {}]   ;;  %s765_s1 = inlined_call_operand.vmem [shape: bf16[64,128], index: 1, kind: input, shape index: {}]   ;;  %s766_s2 = inlined_call_operand.vmem [shape: f32[1,128], index: 2, kind: input, shape index: {}]   ;;  %s767_s3 = inlined_call_operand.hbm [shape: bf16[128,128], index: 3, kind: output, shape index: {0}]   ;;  %s768_s4 = inlined_call_operand.hbm [shape: f32[1,128], index: 4, kind: output, shape index: {1}]   ;;  %s769_s5 = inlined_call_operand.hbm [shape: f32[1,128], index: 5, kind: output, shape index: {2}]  }
   0x1   :  { %v487_v0 = vld [vmem:[%s765_s1 + $0x18] sm:$0xff]  ;;  %v486_v1 = vld [vmem:[%s765_s1 + $0x10] sm:$0xff] }
   0x2   :  { %147 = vmatpush.bf16.msra.mxu0 %v487_v0  ;;  %535 = vmatpush.bf16.msra.mxu1 %v487_v0 }
   0x3   :  { %536 = vmatpush.bf16.msra.mxu2 %v487_v0  ;;  %537 = vmatpush.bf16.msra.mxu3 %v487_v0 }
   0x4   :  { %12 = vsyncpa [#allocation5], 0  ;;  %v485_v2 = vld [vmem:[%s765_s1 + $0x8] sm:$0xff]  ;;  %v484_v3 = vld [vmem:[%s765_s1] sm:$0xff]  ;;  %vm118_vm0 = vcmask 523264   ;;  %v630_v0 = vmov 0.0  }
   0x5   :  { %v476_v4 = vld [vmem:[%s764_s0] sm:$0xff]  ;;  %v478_v5 = vld [vmem:[%s764_s0 + $0x10] sm:$0xff]  ;;  %v477_v8 = vld [vmem:[%s764_s0 + $0x8] sm:$0xff]  ;;  %24 = vst [vmem:[#allocation4] sm:$0x1] %v630_v0  ;;  %s377_s20 = sshll.u32 %s767_s3, 4  ;;  %s378_s20 = int_to_ptr.hbm [resolvable:$true] %s377_s20 }
   0x6   :  { %148 = vmatpush.bf16.msra.mxu0 %v486_v1  ;;  %538 = vmatpush.bf16.msra.mxu1 %v486_v1  ;;  %v480_v6 = vld [vmem:[%s764_s0 + $0x20] sm:$0xff]  ;;  %v482_v7 = vld [vmem:[%s764_s0 + $0x30] sm:$0xff]  ;;  %v479_v9 = vld [vmem:[%s764_s0 + $0x18] sm:$0xff]  ;;  %25 = vst [vmem:[#allocation6] sm:$0x1] %v630_v0  ;;  %s632_s3 = smov 64  }
   0x7   :  { %539 = vmatpush.bf16.msra.mxu2 %v486_v1  ;;  %540 = vmatpush.bf16.msra.mxu3 %v486_v1  ;;  %v481_v10 = vld [vmem:[%s764_s0 + $0x28] sm:$0xff]  ;;  %v483_v11 = vld [vmem:[%s764_s0 + $0x38] sm:$0xff]  ;;  %v713_v14 = vld [vmem:[%s766_s2] ss:$0 sm:$0xff]  ;;  %s631_s0 = smov [#allocation2]   ;;  %s633_s21 = smov 4  }
   0x8   :  { %s375_s2 = sshll.u32 %s631_s0, 4  ;;  %s634_s22 = smov [#allocation4]   ;;  %s376_s2 = int_to_ptr.vmem [resolvable:$true] %s375_s2 }
   0x9   :  { %s389_s23 = sshll.u32 %s634_s22, 4  ;;  %s391_s26 = sshll.u32 %s768_s4, 4  ;;  %s390_s23 = int_to_ptr.vmem [resolvable:$true] %s389_s23  ;;  %s392_s26 = int_to_ptr.hbm [resolvable:$true] %s391_s26 }
   0xa   :  { %149 = vmatpush.bf16.msra.mxu0 %v485_v2  ;;  %541 = vmatpush.bf16.msra.mxu1 %v485_v2  ;;  %s635_s27 = smov [#allocation6]   ;;  %s402_s6 = sshll.u32 %s769_s5, 4  ;;  %s403_s6 = int_to_ptr.hbm [resolvable:$true] %s402_s6 }
   0xb   :  { %542 = vmatpush.bf16.msra.mxu2 %v485_v2  ;;  %543 = vmatpush.bf16.msra.mxu3 %v485_v2  ;;  %s400_s28 = sshll.u32 %s635_s27, 4  ;;  %s401_s28 = int_to_ptr.vmem [resolvable:$true] %s400_s28 }
   0xd   :  { %v331_v0 = vld [vmem:[#allocation6] sm:$0x1] }
   0xe   :  { %150 = vmatpush.bf16.msra.mxu0 %v484_v3  ;;  %544 = vmatpush.bf16.msra.mxu1 %v484_v3 }
   0xf   :  { %545 = vmatpush.bf16.msra.mxu2 %v484_v3  ;;  %546 = vmatpush.bf16.msra.mxu3 %v484_v3 }
  0x11   :  { %468 = vmatmul.msk.bf16.vlgmr.msra.gmra.mxu0 %vm118_vm0, %v476_v4  ;;  %470 = vmatmul.msk.bf16.vlgmr.msra.gmra.mxu1 %vm118_vm0, %v478_v5 }
  0x12   :  { %472 = vmatmul.msk.bf16.vlgmr.msra.gmra.mxu2 %vm118_vm0, %v480_v6  ;;  %474 = vmatmul.msk.bf16.vlgmr.msra.gmra.mxu3 %vm118_vm0, %v482_v7 }
  0x21   :  { %469 = vmatmul.msk.bf16.gmra.mxu0 %vm118_vm0, %v477_v8  ;;  %471 = vmatmul.msk.bf16.gmra.mxu1 %vm118_vm0, %v479_v9 }
  0x22   :  { %473 = vmatmul.msk.bf16.gmra.mxu2 %vm118_vm0, %v481_v10  ;;  %475 = vmatmul.msk.bf16.gmra.mxu3 %vm118_vm0, %v483_v11 }
  0x8e   :  { %v152_v12 = vpop.f32.mrf.mxu0  ;;  %v162_v13 = vpop.f32.mrf.mxu1 }
  0x8f   :  { %v163_v15 = vadd.f32 %v713_v14, %v162_v13  ;;  %v153_v16 = vadd.f32 %v713_v14, %v152_v12 }
  0x91   :  { %v196_v21 = vmax.f32 %v163_v15, 0.0  ;;  %v192_v24 = vmax.f32 %v153_v16, 0.0 }
  0x93   :  { %v332_v49 = vmul.f32 %v192_v24, %v192_v24  ;;  %v336_v5 = vmul.f32 %v196_v21, %v196_v21 }
  0x95   :  { %v172_v17 = vpop.f32.mrf.mxu2  ;;  %v182_v18 = vpop.f32.mrf.mxu3 }
  0x96   :  { %v154_v19 = vpop.f32.mrf.mxu0  ;;  %v164_v20 = vpop.f32.mrf.mxu1  ;;  %v173_v27 = vadd.f32 %v713_v14, %v172_v17  ;;  %v183_v28 = vadd.f32 %v713_v14, %v182_v18 }
  0x97   :  { %v155_v22 = vadd.f32 %v713_v14, %v154_v19  ;;  %v165_v23 = vadd.f32 %v713_v14, %v164_v20 }
  0x98   :  { %v721_v33 = vmax.f32 %v173_v27, 0.0  ;;  %v724_v37 = vmax.f32 %v183_v28, 0.0 }
  0x99   :  { %v193_v25 = vmax.f32 %v155_v22, 0.0  ;;  %v197_v26 = vmax.f32 %v165_v23, 0.0 }
  0x9b   :  { %v491_v29 = vpack.c.bf16 %v193_v25, %v192_v24  ;;  %v501_v30 = vpack.c.bf16 %v197_v26, %v196_v21  ;;  %v333_v46 = vmul.f32 %v193_v25, %v193_v25  ;;  %v308_v53 = vadd.f32 %v193_v25, %v192_v24 }
  0x9c   :  { %v337_v15 = vmul.f32 %v197_v26, %v197_v26 }
  0x9d   :  { %492 = vst [vmem:[#allocation2] sm:$0xff] %v491_v29   ;;  %v174_v31 = vpop.f32.mrf.mxu2  ;;  %v184_v32 = vpop.f32.mrf.mxu3  ;;  %v348_v57 = vadd.f32 %v333_v46, %v332_v49 }
  0x9e   :  { %529 = vst [vmem:[#allocation2 + $0x10] sm:$0xff] %v501_v30   ;;  %v157_v34 = vpop.f32.mrf.mxu0  ;;  %v167_v35 = vpop.f32.mrf.mxu1  ;;  %v175_v36 = vadd.f32 %v713_v14, %v174_v31  ;;  %v185_v38 = vadd.f32 %v713_v14, %v184_v32 }
  0x9f   :  { %v158_v39 = vadd.f32 %v713_v14, %v157_v34  ;;  %v168_v45 = vadd.f32 %v713_v14, %v167_v35 }
  0xa0   :  { %v728_v40 = vmax.f32 %v175_v36, 0.0  ;;  %v730_v41 = vmax.f32 %v185_v38, 0.0 }
  0xa1   :  { %v194_v42 = vmax.f32 %v158_v39, 0.0  ;;  %v198_v54 = vmax.f32 %v168_v45, 0.0 }
  0xa2   :  { %v511_v43 = vpack.c.bf16 %v728_v40, %v721_v33  ;;  %v521_v44 = vpack.c.bf16 %v730_v41, %v724_v37  ;;  %v341_v30 = vmul.f32 %v728_v40, %v728_v40  ;;  %v345_v45 = vmul.f32 %v730_v41, %v730_v41 }
  0xa3   :  { %v334_v50 = vmul.f32 %v194_v42, %v194_v42  ;;  %v309_v58 = vadd.f32 %v308_v53, %v194_v42  ;;  %v338_v20 = vmul.f32 %v198_v54, %v198_v54 }
  0xa4   :  { %531 = vst [vmem:[#allocation2 + $0x20] sm:$0xff] %v511_v43  }
  0xa5   :  { %v177_v47 = vpop.f32.mrf.mxu2  ;;  %533 = vst [vmem:[#allocation2 + $0x30] sm:$0xff] %v521_v44   ;;  %v187_v48 = vpop.f32.mrf.mxu3  ;;  %v349_v61 = vadd.f32 %v348_v57, %v334_v50 }
  0xa6   :  { %v159_v51 = vpop.f32.mrf.mxu0  ;;  %v169_v52 = vpop.f32.mrf.mxu1  ;;  %v178_v62 = vadd.f32 %v713_v14, %v177_v47  ;;  %v188_v63 = vadd.f32 %v713_v14, %v187_v48 }
  0xa7   :  { %v160_v55 = vadd.f32 %v713_v14, %v159_v51  ;;  %v170_v56 = vadd.f32 %v713_v14, %v169_v52 }
  0xa8   :  { %v202_v10 = vmax.f32 %v178_v62, 0.0  ;;  %v206_v12 = vmax.f32 %v188_v63, 0.0  ;;  %v307_v62 = vld [vmem:[#allocation4] sm:$0x1] }
  0xa9   :  { %v195_v59 = vmax.f32 %v160_v55, 0.0  ;;  %v199_v60 = vmax.f32 %v170_v56, 0.0 }
  0xaa   :  { %v342_v35 = vmul.f32 %v202_v10, %v202_v10 }
  0xab   :  { %v496_v1 = vpack.c.bf16 %v195_v59, %v194_v42  ;;  %v310_v2 = vadd.f32 %v309_v58, %v195_v59  ;;  %v335_v3 = vmul.f32 %v195_v59, %v195_v59  ;;  %v506_v4 = vpack.c.bf16 %v199_v60, %v198_v54 }
  0xad   :  { %528 = vst [vmem:[#allocation2 + $0x8] sm:$0xff] %v496_v1   ;;  %v311_v6 = vadd.f32 %v310_v2, %v196_v21  ;;  %v350_v7 = vadd.f32 %v349_v61, %v335_v3  ;;  %v179_v8 = vpop.f32.mrf.mxu2  ;;  %v189_v9 = vpop.f32.mrf.mxu3 }
  0xae   :  { %530 = vst [vmem:[#allocation2 + $0x18] sm:$0xff] %v506_v4   ;;  %v180_v11 = vadd.f32 %v713_v14, %v179_v8  ;;  %v190_v13 = vadd.f32 %v713_v14, %v189_v9  ;;  %v339_v14 = vmul.f32 %v199_v60, %v199_v60 }
  0xaf   :  { %v351_v16 = vadd.f32 %v350_v7, %v336_v5  ;;  %v312_v17 = vadd.f32 %v311_v6, %v197_v26  ;;  %v340_v26 = vmul.f32 %v721_v33, %v721_v33 }
  0xb0   :  { %v203_v18 = vmax.f32 %v180_v11, 0.0  ;;  %v207_v19 = vmax.f32 %v190_v13, 0.0 }
  0xb1   :  { %v313_v21 = vadd.f32 %v312_v17, %v198_v54  ;;  %v352_v22 = vadd.f32 %v351_v16, %v337_v15 }
  0xb2   :  { %v516_v23 = vpack.c.bf16 %v203_v18, %v202_v10  ;;  %v526_v24 = vpack.c.bf16 %v207_v19, %v206_v12  ;;  %v343_v42 = vmul.f32 %v203_v18, %v203_v18  ;;  %v347_v52 = vmul.f32 %v207_v19, %v207_v19 }
  0xb3   :  { %v314_v25 = vadd.f32 %v313_v21, %v199_v60  ;;  %v353_v27 = vadd.f32 %v352_v22, %v338_v20 }
  0xb4   :  { %532 = vst [vmem:[#allocation2 + $0x28] sm:$0xff] %v516_v23  }
  0xb5   :  { %v315_v28 = vadd.f32 %v314_v25, %v721_v33  ;;  %v354_v29 = vadd.f32 %v353_v27, %v339_v14  ;;  %534 = vst [vmem:[#allocation2 + $0x38] sm:$0xff] %v526_v24   ;;  %v344_v33 = vmul.f32 %v724_v37, %v724_v37 }
  0xb6   :  { %383 = dma.vmem_to_hbm [thread:$0]  %s376_s2, 1024, %s378_s20, [#allocation3], %s632_s3, %s632_s3, %s633_s21  }
  0xb7   :  { %v355_v31 = vadd.f32 %v354_v29, %v340_v26  ;;  %v316_v32 = vadd.f32 %v315_v28, %v728_v40  ;;  %v346_v40 = vmul.f32 %v206_v12, %v206_v12 }
  0xb9   :  { %v317_v34 = vadd.f32 %v316_v32, %v202_v10  ;;  %v356_v36 = vadd.f32 %v355_v31, %v341_v30 }
  0xbb   :  { %v357_v38 = vadd.f32 %v356_v36, %v342_v35  ;;  %v318_v39 = vadd.f32 %v317_v34, %v203_v18 }
  0xbd   :  { %v319_v43 = vadd.f32 %v318_v39, %v724_v37  ;;  %v358_v44 = vadd.f32 %v357_v38, %v343_v42 }
  0xbf   :  { %v359_v46 = vadd.f32 %v358_v44, %v344_v33  ;;  %v320_v47 = vadd.f32 %v319_v43, %v730_v41 }
  0xc1   :  { %v321_v48 = vadd.f32 %v320_v47, %v206_v12  ;;  %v360_v49 = vadd.f32 %v359_v46, %v345_v45 }
  0xc3   :  { %v361_v50 = vadd.f32 %v360_v49, %v346_v40  ;;  %v322_v51 = vadd.f32 %v321_v48, %v207_v19 }
  0xc5   :  { %v323_v53 = vrot.slane %v322_v51, 4  ;;  %v362_v54 = vadd.f32 %v361_v50, %v347_v52 }
  0xc7   :  { %v324_v55 = vadd.f32 %v323_v53, %v322_v51  ;;  %v363_v56 = vrot.slane %v362_v54, 4 }
  0xc9   :  { %v325_v57 = vrot.slane %v324_v55, 2  ;;  %v364_v58 = vadd.f32 %v363_v56, %v362_v54 }
  0xcb   :  { %v326_v37 = vadd.f32 %v325_v57, %v324_v55  ;;  %v365_v59 = vrot.slane %v364_v58, 2 }
  0xcd   :  { %v327_v60 = vrot.slane %v326_v37, 1  ;;  %v366_v61 = vadd.f32 %v365_v59, %v364_v58 }
  0xcf   :  { %v328_v41 = vadd.f32 %v327_v60, %v326_v37  ;;  %v367_v63 = vrot.slane %v366_v61, 1 }
  0xd1   :  { %v329_v1 = vadd.f32 %v328_v41, %v307_v62  ;;  %v368_v2 = vadd.f32 %v367_v63, %v366_v61 }
  0xd3   :  { %330 = vst [vmem:[#allocation4] sm:$0x1] %v329_v1  ;;  %v369_v3 = vadd.f32 %v368_v2, %v331_v0 }
  0xd4   :  { %394 = dma.vmem_to_hbm [thread:$0]  %s390_s23, 16, %s392_s26, [#allocation5]  }
  0xd5   :  { %370 = vst [vmem:[#allocation6] sm:$0x1] %v369_v3 }
  0xd6   :  { %405 = dma.vmem_to_hbm [thread:$0]  %s401_s28, 16, %s403_s6, [#allocation5]  }
  0xd7   :  { %626 = dma.done.wait [#allocation3], 1024  }
  0xd8   :  { %627 = vsyncadd [#allocation3], 4294966272 }
  0xd9   :  { %628 = dma.done.wait [#allocation5], 32  }
  0xda   :  { %629 = vsyncadd [#allocation5], 4294967264 }
  0xdb   :  { %418 = vsyncpa [#allocation3], 1 }
  0xdc   :  { %419 = vsyncpa [#allocation5], 1 }

</bundles_post_ra>
